<compile_context>
chip_gen: v6e
topology: v6e:2x2x1
jax: 0.10.0
libtpu: 0.0.40
codegen_flags: <defaults>
</compile_context>

<pallas_src>
import jax
import jax.numpy as jnp
from jax import lax
from jax.experimental import pallas as pl
from jax.experimental.pallas import tpu as pltpu

LN_EPS = 1e-5  # PyTorch nn.LayerNorm default


def _conv_embed_kernel(p_ref, w_ref, prm_ref, o_ref):
    # p_ref:   (1, K, TN)  im2col patch columns for this (batch, N-tile)
    # w_ref:   (C, K)      flattened conv weight (Cout, Cin*kh*kw)
    # prm_ref: (C, 3)      [:,0]=conv bias, [:,1]=LN gamma, [:,2]=LN beta
    # o_ref:   (1, C, TN)  lane-dense, channel-major output block
    y = jnp.dot(w_ref[...], p_ref[0],
                preferred_element_type=jnp.float32)            # (C, TN) on MXU
    y = y + prm_ref[:, 0:1]                                    # conv bias

    # LayerNorm over the embedding/channel axis (axis 0 in this layout).
    mean = jnp.mean(y, axis=0, keepdims=True)                  # (1, TN)
    centered = y - mean
    var = jnp.mean(centered * centered, axis=0, keepdims=True)
    y = centered * lax.rsqrt(var + LN_EPS)
    y = y * prm_ref[:, 1:2] + prm_ref[:, 2:3]                  # gamma, beta

    o_ref[0] = y.astype(o_ref.dtype)


def _im2col_kn(x, k, stride, pad):
    """x: (B, Cin, H, W) -> patches (B, Cin*k*k, Ho*Wo) via static strided slices."""
    B, Cin, H, W = x.shape
    xp = jnp.pad(x, ((0, 0), (0, 0), (pad, pad), (pad, pad)))
    Ho = (H + 2 * pad - k) // stride + 1
    Wo = (W + 2 * pad - k) // stride + 1
    cols = []
    for kh in range(k):
        for kw in range(k):
            s = xp[:, :, kh:kh + stride * (Ho - 1) + 1:stride,
                         kw:kw + stride * (Wo - 1) + 1:stride]   # (B, Cin, Ho, Wo)
            cols.append(s)
    # (B, Cin, k*k, Ho, Wo) -> (B, K, N). K index = cin*k*k + kh*k + kw, which
    # matches the flattening of the PyTorch Conv2d weight (Cout, Cin, kh, kw).
    patches = jnp.stack(cols, axis=2).reshape(B, Cin * k * k, Ho * Wo)
    return patches, Ho, Wo


def _pick_tile_n(N):
    # Lane-dense tiles (multiples of 128, capped at 512 for a v7x-safe VMEM
    # budget) that divide N exactly; small / odd N falls back to the full
    # extent, which is always a legal block shape.
    if N <= 512:
        return N
    for tn in (512, 256, 128):
        if N % tn == 0:
            return tn
    # TODO(synk): handle ragged N with partial tiles + masked writeback.
    return N


def conv_embedding_forward(x, conv_w, conv_b, ln_g, ln_b,
                           patch_size=7, stride=4, padding=2):
    """x: (B, Cin, H, W) NCHW. Returns (B, C_embed, Ho, Wo) NCHW, same as PyTorch."""
    B, Cin, H, W = x.shape
    Cout = conv_w.shape[0]
    patches, Ho, Wo = _im2col_kn(x, patch_size, stride, padding)     # (B, K, N)
    K, N = patches.shape[1], patches.shape[2]
    TN = _pick_tile_n(N)
    n_tiles = pl.cdiv(N, TN)

    w_mat = conv_w.reshape(Cout, K)                                  # (C, K)
    params = jnp.stack([conv_b, ln_g, ln_b], axis=1)                 # (C, 3)

    cost = pl.CostEstimate(
        flops=2 * B * N * K * Cout + 8 * B * N * Cout,
        transcendentals=B * N,
        bytes_accessed=4 * (B * K * N + Cout * K + Cout * 3 + B * Cout * N),
    )

    out = pl.pallas_call(
        _conv_embed_kernel,
        out_shape=jax.ShapeDtypeStruct((B, Cout, N), x.dtype),
        grid_spec=pltpu.PrefetchScalarGridSpec(
            num_scalar_prefetch=0,
            grid=(B, n_tiles),
            in_specs=[
                pl.BlockSpec((1, K, TN), lambda b, n: (b, 0, n)),
                pl.BlockSpec((Cout, K), lambda b, n: (0, 0)),
                pl.BlockSpec((Cout, 3), lambda b, n: (0, 0)),
            ],
            out_specs=pl.BlockSpec((1, Cout, TN), lambda b, n: (b, 0, n)),
        ),
        compiler_params=pltpu.CompilerParams(
            dimension_semantics=("parallel", "parallel")),
        cost_estimate=cost,
    )(patches, w_mat, params)

    # (B, C, N) -> (B, C, Ho, Wo): pure reshape, no extra HBM transpose pass.
    return out.reshape(B, Cout, Ho, Wo)


def _reference(x, conv_w, conv_b, ln_g, ln_b, patch_size, stride, padding):
    y = lax.conv_general_dilated(
        x, conv_w, window_strides=(stride, stride),
        padding=[(padding, padding), (padding, padding)],
        dimension_numbers=("NCHW", "OIHW", "NCHW"))
    y = y + conv_b[None, :, None, None]
    B, C, Ho, Wo = y.shape
    y = y.transpose(0, 2, 3, 1).reshape(B, Ho * Wo, C)
    mean = jnp.mean(y, axis=-1, keepdims=True)
    var = jnp.mean((y - mean) ** 2, axis=-1, keepdims=True)
    y = (y - mean) / jnp.sqrt(var + LN_EPS) * ln_g + ln_b
    return y.reshape(B, Ho, Wo, C).transpose(0, 3, 1, 2)


if __name__ == "__main__":
    # Module defaults: patch_size=7, in_channels=3, embedding_dim=64, stride=4, padding=2
    patch_size, in_channels, embedding_dim, stride, padding = 7, 3, 64, 4, 2
    B, H, W = 2, 16, 16

    key = jax.random.PRNGKey(0)
    kx, kw, kb = jax.random.split(key, 3)
    x = jax.random.normal(kx, (B, in_channels, H, W), dtype=jnp.float32)
    conv_w = 0.1 * jax.random.normal(
        kw, (embedding_dim, in_channels, patch_size, patch_size), dtype=jnp.float32)
    conv_b = 0.1 * jax.random.normal(kb, (embedding_dim,), dtype=jnp.float32)
    ln_g = jnp.ones((embedding_dim,), dtype=jnp.float32)   # nn.LayerNorm default init
    ln_b = jnp.zeros((embedding_dim,), dtype=jnp.float32)

    out = conv_embedding_forward(x, conv_w, conv_b, ln_g, ln_b,
                                 patch_size=patch_size, stride=stride, padding=padding)
    out = jax.block_until_ready(out)

    ref = _reference(x, conv_w, conv_b, ln_g, ln_b, patch_size, stride, padding)
    assert out.shape == ref.shape, (out.shape, ref.shape)
    assert jnp.max(jnp.abs(out - ref)) < 1e-4

    print("KERNEL_OK")
</pallas_src>

<mosaic_0001>
module attributes {stable_mosaic.version = 11 : i64} {
  func.func @_conv_embed_kernel(%arg0: i32, %arg1: i32, %arg2: memref<1x147x16xf32, #tpu.memory_space<vmem>>, %arg3: memref<64x147xf32, #tpu.memory_space<vmem>>, %arg4: memref<64x3xf32, #tpu.memory_space<vmem>>, %arg5: memref<1x64x16xf32, #tpu.memory_space<vmem>>) attributes {dimension_semantics = [#tpu.dimension_semantics<parallel>, #tpu.dimension_semantics<parallel>], iteration_bounds = array<i64: 2, 1>, scalar_prefetch = 0 : i64, scratch_operands = 0 : i64, tpu.core_type = #tpu.core_type<tc>, window_params = [{transform_indices = @transform_0, window_bounds = array<i64: 1, 147, 16>}, {pipeline_mode = #tpu.pipeline_mode<synchronous>, transform_indices = @transform_1, window_bounds = array<i64: 64, 147>}, {pipeline_mode = #tpu.pipeline_mode<synchronous>, transform_indices = @transform_2, window_bounds = array<i64: 64, 3>}, {transform_indices = @transform_3, window_bounds = array<i64: 1, 64, 16>}]} {
    %c0 = arith.constant 0 : index
    %c0_0 = arith.constant 0 : index
    %0 = vector.load %arg3[%c0, %c0_0] : memref<64x147xf32, #tpu.memory_space<vmem>>, vector<64x147xf32>
    %c0_1 = arith.constant 0 : index
    %c0_2 = arith.constant 0 : index
    %c0_3 = arith.constant 0 : index
    %1 = vector.load %arg2[%c0_1, %c0_2, %c0_3] : memref<1x147x16xf32, #tpu.memory_space<vmem>>, vector<1x147x16xf32>
    %2 = vector.shape_cast %1 : vector<1x147x16xf32> to vector<147x16xf32>
    %cst = arith.constant dense<0.000000e+00> : vector<64x16xf32>
    %3 = tpu.matmul %0, %2, %cst {dimension_numbers = #tpu.dot_dimension_numbers<[1], [0], [0], [1], [0, 0, 1, 1], [], []>} : vector<64x147xf32>, vector<147x16xf32>, vector<64x16xf32> -> vector<64x16xf32>
    %c0_4 = arith.constant 0 : index
    %c0_5 = arith.constant 0 : index
    %4 = vector.load %arg4[%c0_4, %c0_5] : memref<64x3xf32, #tpu.memory_space<vmem>>, vector<64x1xf32>
    %5 = vector.broadcast %4 : vector<64x1xf32> to vector<64x16xf32>
    %6 = arith.addf %3, %5 : vector<64x16xf32>
    %cst_6 = arith.constant dense<0.000000e+00> : vector<16xf32>
    %7 = vector.multi_reduction <add>, %6, %cst_6 [0] : vector<64x16xf32> to vector<16xf32>
    %8 = vector.shape_cast %7 : vector<16xf32> to vector<1x16xf32>
    %cst_7 = arith.constant 6.400000e+01 : f32
    %9 = vector.broadcast %cst_7 : f32 to vector<1x16xf32>
    %10 = arith.divf %8, %9 : vector<1x16xf32>
    %11 = vector.broadcast %10 : vector<1x16xf32> to vector<64x16xf32>
    %12 = arith.subf %6, %11 : vector<64x16xf32>
    %13 = arith.mulf %12, %12 : vector<64x16xf32>
    %cst_8 = arith.constant dense<0.000000e+00> : vector<16xf32>
    %14 = vector.multi_reduction <add>, %13, %cst_8 [0] : vector<64x16xf32> to vector<16xf32>
    %15 = vector.shape_cast %14 : vector<16xf32> to vector<1x16xf32>
    %cst_9 = arith.constant 6.400000e+01 : f32
    %16 = vector.broadcast %cst_9 : f32 to vector<1x16xf32>
    %17 = arith.divf %15, %16 : vector<1x16xf32>
    %cst_10 = arith.constant 9.99999974E-6 : f32
    %18 = vector.broadcast %cst_10 : f32 to vector<1x16xf32>
    %19 = arith.addf %17, %18 : vector<1x16xf32>
    %20 = math.rsqrt %19 : vector<1x16xf32>
    %21 = vector.broadcast %20 : vector<1x16xf32> to vector<64x16xf32>
    %22 = arith.mulf %12, %21 : vector<64x16xf32>
    %c0_11 = arith.constant 0 : index
    %c1 = arith.constant 1 : index
    %23 = vector.load %arg4[%c0_11, %c1] : memref<64x3xf32, #tpu.memory_space<vmem>>, vector<64x1xf32>
    %24 = vector.broadcast %23 : vector<64x1xf32> to vector<64x16xf32>
    %25 = arith.mulf %22, %24 : vector<64x16xf32>
    %c0_12 = arith.constant 0 : index
    %c2 = arith.constant 2 : index
    %26 = vector.load %arg4[%c0_12, %c2] : memref<64x3xf32, #tpu.memory_space<vmem>>, vector<64x1xf32>
    %27 = vector.broadcast %26 : vector<64x1xf32> to vector<64x16xf32>
    %28 = arith.addf %25, %27 : vector<64x16xf32>
    %c0_13 = arith.constant 0 : index
    %c0_14 = arith.constant 0 : index
    %c0_15 = arith.constant 0 : index
    %29 = vector.load %arg5[%c0_13, %c0_14, %c0_15] : memref<1x64x16xf32, #tpu.memory_space<vmem>>, vector<1x64x16xf32>
    %30 = vector.shape_cast %29 : vector<1x64x16xf32> to vector<64x16xf32>
    %31 = vector.shape_cast %28 : vector<64x16xf32> to vector<1x64x16xf32>
    tpu.vector_store %arg5[%c0_13, %c0_14, %c0_15], %31 {strides = array<i32>} : memref<1x64x16xf32, #tpu.memory_space<vmem>>, vector<1x64x16xf32>,
    return
  }
  func.func @transform_0(%arg0: i32, %arg1: i32) -> (i32, i32, i32) {
    %c0_i32 = arith.constant 0 : i32
    %c0_i32_0 = arith.constant 0 : i32
    return %arg0, %c0_i32, %arg1 : i32, i32, i32
  }
  func.func @transform_1(%arg0: i32, %arg1: i32) -> (i32, i32) {
    %c0_i32 = arith.constant 0 : i32
    %c0_i32_0 = arith.constant 0 : i32
    %c0_i32_1 = arith.constant 0 : i32
    return %c0_i32, %c0_i32_0 : i32, i32
  }
  func.func @transform_2(%arg0: i32, %arg1: i32) -> (i32, i32) {
    %c0_i32 = arith.constant 0 : i32
    %c0_i32_0 = arith.constant 0 : i32
    %c0_i32_1 = arith.constant 0 : i32
    return %c0_i32, %c0_i32_0 : i32, i32
  }
  func.func @transform_3(%arg0: i32, %arg1: i32) -> (i32, i32, i32) {
    %c0_i32 = arith.constant 0 : i32
    %c0_i32_0 = arith.constant 0 : i32
    return %arg0, %c0_i32, %arg1 : i32, i32, i32
  }
}

</mosaic_0001>

<bundles_post_ra>
// kernel: tpu_custom_call.1
= control target key start
LH: loop header
LB: loop body
LE: loop exit
PB: predicated region body
PF: predicated region fallthrough
CT: control target
= control target key end

     0   :  { %s805_s12 = smov 0   ;;  %s807_s13 = smov 0   ;;  %s1015_s0 = inlined_call_operand.vmem [shape: f32[2,147,16], index: 0, kind: input, shape index: {}]   ;;  %s1016_s1 = inlined_call_operand.vmem [shape: f32[64,147], index: 1, kind: input, shape index: {}]   ;;  %s1017_s2 = inlined_call_operand.vmem [shape: f32[64,3], index: 2, kind: input, shape index: {}]   ;;  %s1018_s3 = inlined_call_operand.vmem [shape: f32[2,64,16], index: 3, kind: output, shape index: {}]  }
   0x1   :  { %s809_s14 = smov 0  }
   0x2 LB: > { %s25_s15 = sadd.s32 1, %s775_s13  ;;  %p666_p0 = scmp.ge.s32.totalorder %s779_s14, 1  ;;  %s779_s14 = sphi %s809_s14, %s13_s14   ;;  %s775_s13 = sphi %s807_s13, %s1020_s13   ;;  %s771_s12 = sphi %s805_s12, %s1019_s12  }
   0x3   : > { %p27_p1 = scmp.ge.s32.totalorder %s25_s15, 2  ;;  %p156_p2 = scmp.lt.s32.totalorder %s779_s14, 3 }
   0x5   : > { %s1022_s15 = smov (%p27_p1, %s25_s15), 0  ;;  %p157_p3 = pnand %p666_p0, %p156_p2 }
   0x6   : > { %p186_p4 = scmp.lt.s32.totalorder (!%p157_p3), %s771_s12, 1 }
   0x7   : > { %160 = sbr.rel (%p157_p3) target bundleno = 345 (0x159), region = 32 }
   0xc   : > { %v203_v0 = vld [vmem:[%s1016_s1 + $0x8] sm:$0xff]  ;;  %vm285_vm0 = vcmask 154624   ;;  %v781_v2 = vmov 0.0   ;;  %s1024_s12 = smov (!%p186_p4, %s771_s12), 1  ;;  %v782_v3 = vmov 0   ;;  %v839_v4 = vld [vmem:[%s1017_s2] sm:$0xff] }
   0xd   : > { %v211_v1 = vld [vmem:[%s1016_s1 + $0x48] sm:$0xff]  ;;  %314 = vmatprep.subr.mxu0 %v781_v2  ;;  %682 = vmatprep.subr.mxu1 %v781_v2  ;;  %s720_s20 = smul.u32 152, %s1024_s12  ;;  %v850_v5 = vld [vmem:[%s1017_s2 + $0x10] sm:$0xff]  ;;  %vm310_vm1 = vcmask 1042432   ;;  %v202_v25 = vld [vmem:[%s1016_s1] sm:$0xff]  ;;  %v783_v45 = vmov 1  }
   0xe   : > { %671 = vmatprep.mubr.msk.f32.mxu0 %vm285_vm0, %v203_v0  ;;  %675 = vmatprep.mubr.msk.f32.mxu1 %vm285_vm0, %v211_v1  ;;  %v210_v26 = vld [vmem:[%s1016_s1 + $0x40] sm:$0xff]  ;;  %v205_v27 = vld [vmem:[%s1016_s1 + $0x18] sm:$0xff]  ;;  %v238_v29 = vld [vmem:[%s1017_s2 + $0x8] sm:$0xff]  ;;  %v784_v46 = vmov 2   ;;  %vm419_vm2 = vcmask 130048   ;;  %s681_s22 = sshll.u32 %s1024_s12, 6 }
   0xf   : > { %749 = vset.pattern.permute.xlu0 %v782_v3  ;;  %750 = vset.pattern.permute.xlu1 %v782_v3  ;;  %s844_s25 = scalar_lea.vmem %s1015_s0, %s720_s20  ;;  %v213_v28 = vld [vmem:[%s1016_s1 + $0x58] sm:$0xff]  ;;  %v204_v31 = vld [vmem:[%s1016_s1 + $0x10] sm:$0xff]  ;;  %v207_v33 = vld [vmem:[%s1016_s1 + $0x28] sm:$0xff] }
  0x10   : > { %247 = vperm.xlu0 %749, %v839_v4   ;;  %v233_v6 = vld [vmem:[%s844_s25 + $0x78] sm:$0xff]  ;;  %v232_v7 = vld [vmem:[%s844_s25 + $0x70] sm:$0xff]  ;;  %257 = vperm.xlu1 %750, %v850_v5   ;;  %v231_v8 = vld [vmem:[%s844_s25 + $0x68] sm:$0xff] }
  0x11   : > { %315 = vmatpush1.msra.mxu0 %v233_v6  ;;  %701 = vmatpush1.msra.mxu1 %v233_v6  ;;  %v230_v9 = vld [vmem:[%s844_s25 + $0x60] sm:$0xff]  ;;  %v229_v10 = vld [vmem:[%s844_s25 + $0x58] sm:$0xff]  ;;  %v228_v11 = vld [vmem:[%s844_s25 + $0x50] sm:$0xff] }
  0x12   : > { %316 = vmatprep.subr.mxu0 %v781_v2  ;;  %683 = vmatprep.subr.mxu1 %v781_v2  ;;  %v227_v12 = vld [vmem:[%s844_s25 + $0x48] sm:$0xff]  ;;  %v226_v13 = vld [vmem:[%s844_s25 + $0x40] sm:$0xff]  ;;  %v225_v14 = vld [vmem:[%s844_s25 + $0x38] sm:$0xff] }
  0x13   : > { %317 = vmatpush1.msra.mxu0 %v232_v7  ;;  %702 = vmatpush1.msra.mxu1 %v232_v7  ;;  %v224_v15 = vld [vmem:[%s844_s25 + $0x30] sm:$0xff]  ;;  %v223_v16 = vld [vmem:[%s844_s25 + $0x28] sm:$0xff]  ;;  %v222_v17 = vld [vmem:[%s844_s25 + $0x20] sm:$0xff] }
  0x14   : > { %318 = vmatprep.subr.mxu0 %v781_v2  ;;  %684 = vmatprep.subr.mxu1 %v781_v2  ;;  %v221_v18 = vld [vmem:[%s844_s25 + $0x18] sm:$0xff]  ;;  %v220_v19 = vld [vmem:[%s844_s25 + $0x10] sm:$0xff]  ;;  %v219_v20 = vld [vmem:[%s844_s25 + $0x8] sm:$0xff] }
  0x15   : > { %319 = vmatpush1.msra.mxu0 %v231_v8  ;;  %703 = vmatpush1.msra.mxu1 %v231_v8  ;;  %v218_v21 = vld [vmem:[%s844_s25] sm:$0xff]  ;;  %v236_v22 = vld [vmem:[%s844_s25 + $0x90] sm:$0x7]  ;;  %v235_v23 = vld [vmem:[%s844_s25 + $0x88] sm:$0xff] }
  0x16   : > { %320 = vmatprep.subr.mxu0 %v781_v2  ;;  %685 = vmatprep.subr.mxu1 %v781_v2  ;;  %v234_v24 = vld [vmem:[%s844_s25 + $0x80] sm:$0xff]  ;;  %v240_v30 = vld [vmem:[%s1017_s2 + $0x18] sm:$0xff]  ;;  %v212_v32 = vld [vmem:[%s1016_s1 + $0x50] sm:$0xff]  ;;  %s201_s25 = scalar_lea.vmem %s1018_s3, %s681_s22 }
  0x17   : > { %321 = vmatpush1.msra.mxu0 %v230_v9  ;;  %704 = vmatpush1.msra.mxu1 %v230_v9  ;;  %v215_v34 = vld [vmem:[%s1016_s1 + $0x68] sm:$0xff]  ;;  %v241_v35 = vld [vmem:[%s1017_s2 + $0x20] sm:$0xff]  ;;  %v209_v39 = vld [vmem:[%s1016_s1 + $0x38] sm:$0xff] }
  0x18   : > { %322 = vmatprep.subr.mxu0 %v781_v2  ;;  %686 = vmatprep.subr.mxu1 %v781_v2  ;;  %v242_v36 = vld [vmem:[%s1017_s2 + $0x28] sm:$0xff]  ;;  %v206_v37 = vld [vmem:[%s1016_s1 + $0x20] sm:$0xff]  ;;  %v217_v40 = vld [vmem:[%s1016_s1 + $0x78] sm:$0xff] }
  0x19   : > { %323 = vmatpush1.msra.mxu0 %v229_v10  ;;  %705 = vmatpush1.msra.mxu1 %v229_v10  ;;  %v214_v38 = vld [vmem:[%s1016_s1 + $0x60] sm:$0xff]  ;;  %v243_v41 = vld [vmem:[%s1017_s2 + $0x30] sm:$0xff]  ;;  %v244_v42 = vld [vmem:[%s1017_s2 + $0x38] sm:$0xff] }
  0x1a   : > { %324 = vmatprep.subr.mxu0 %v781_v2  ;;  %687 = vmatprep.subr.mxu1 %v781_v2  ;;  %v208_v43 = vld [vmem:[%s1016_s1 + $0x30] sm:$0xff] }
  0x1b   : > { %325 = vmatpush1.msra.mxu0 %v228_v11  ;;  %706 = vmatpush1.msra.mxu1 %v228_v11  ;;  %v216_v44 = vld [vmem:[%s1016_s1 + $0x70] sm:$0xff] }
  0x1c   : > { %326 = vmatprep.subr.mxu0 %v781_v2  ;;  %688 = vmatprep.subr.mxu1 %v781_v2 }
  0x1d   : > { %327 = vmatpush1.msra.mxu0 %v227_v12  ;;  %707 = vmatpush1.msra.mxu1 %v227_v12 }
  0x1e   : > { %328 = vmatprep.subr.mxu0 %v781_v2  ;;  %689 = vmatprep.subr.mxu1 %v781_v2 }
  0x1f   : > { %329 = vmatpush1.msra.mxu0 %v226_v13  ;;  %708 = vmatpush1.msra.mxu1 %v226_v13 }
  0x20   : > { %330 = vmatprep.subr.mxu0 %v781_v2  ;;  %690 = vmatprep.subr.mxu1 %v781_v2 }
  0x21   : > { %331 = vmatpush1.msra.mxu0 %v225_v14  ;;  %709 = vmatpush1.msra.mxu1 %v225_v14 }
  0x22   : > { %332 = vmatprep.subr.mxu0 %v781_v2  ;;  %691 = vmatprep.subr.mxu1 %v781_v2 }
  0x23   : > { %333 = vmatpush1.msra.mxu0 %v224_v15  ;;  %710 = vmatpush1.msra.mxu1 %v224_v15 }
  0x24   : > { %334 = vmatprep.subr.mxu0 %v781_v2  ;;  %692 = vmatprep.subr.mxu1 %v781_v2 }
  0x25   : > { %335 = vmatpush1.msra.mxu0 %v223_v16  ;;  %711 = vmatpush1.msra.mxu1 %v223_v16 }
  0x26   : > { %336 = vmatprep.subr.mxu0 %v781_v2  ;;  %693 = vmatprep.subr.mxu1 %v781_v2 }
  0x27   : > { %337 = vmatpush1.msra.mxu0 %v222_v17  ;;  %712 = vmatpush1.msra.mxu1 %v222_v17 }
  0x28   : > { %338 = vmatprep.subr.mxu0 %v781_v2  ;;  %694 = vmatprep.subr.mxu1 %v781_v2 }
  0x29   : > { %339 = vmatpush1.msra.mxu0 %v221_v18  ;;  %713 = vmatpush1.msra.mxu1 %v221_v18 }
  0x2a   : > { %340 = vmatprep.subr.mxu0 %v781_v2  ;;  %695 = vmatprep.subr.mxu1 %v781_v2 }
  0x2b   : > { %341 = vmatpush1.msra.mxu0 %v220_v19  ;;  %714 = vmatpush1.msra.mxu1 %v220_v19 }
  0x2c   : > { %342 = vmatprep.subr.mxu0 %v781_v2  ;;  %696 = vmatprep.subr.mxu1 %v781_v2 }
  0x2d   : > { %343 = vmatpush1.msra.mxu0 %v219_v20  ;;  %715 = vmatpush1.msra.mxu1 %v219_v20 }
  0x2e   : > { %344 = vmatprep.subr.mxu0 %v781_v2  ;;  %697 = vmatprep.subr.mxu1 %v781_v2 }
  0x2f   : > { %345 = vmatpush1.msra.mxu0 %v218_v21  ;;  %716 = vmatpush1.msra.mxu1 %v218_v21 }
  0x30   : > { %372 = vmatprep.subr.mxu0 %v781_v2  ;;  %698 = vmatprep.subr.mxu1 %v781_v2 }
  0x31   : > { %670 = vmatpush2.msk.msra.mxu0 %vm310_vm1, %v236_v22  ;;  %717 = vmatpush2.msk.msra.mxu1 %vm310_vm1, %v236_v22 }
  0x32   : > { %374 = vmatprep.subr.mxu0 %v781_v2  ;;  %699 = vmatprep.subr.mxu1 %v781_v2 }
  0x33   : > { %375 = vmatpush2.msra.mxu0 %v235_v23  ;;  %718 = vmatpush2.msra.mxu1 %v235_v23 }
  0x34   : > { %376 = vmatprep.subr.mxu0 %v781_v2  ;;  %700 = vmatprep.subr.mxu1 %v781_v2 }
  0x35   : > { %377 = vmatpush2.msra.mxu0 %v234_v24  ;;  %719 = vmatpush2.msra.mxu1 %v234_v24 }
  0x36   : > { %379 = vmatmul.mubr.f32.vlgmr.msra.gmra.mxu0 %v202_v25  ;;  %399 = vmatmul.mubr.f32.vlgmr.msra.gmra.mxu1 %v210_v26 }
  0x37   : > { %672 = vmatprep.mubr.msk.f32.mxu0 %vm285_vm0, %v205_v27  ;;  %676 = vmatprep.mubr.msk.f32.mxu1 %vm285_vm0, %v213_v28 }
  0x38   : > { %252 = vperm.xlu0 %749, %v238_v29   ;;  %262 = vperm.xlu1 %750, %v240_v30  }
  0x3a   : > { %384 = vmatmul.mubr.f32.gmra.mxu0 %v204_v31  ;;  %404 = vmatmul.mubr.f32.gmra.mxu1 %v212_v32 }
  0x3b   : > { %673 = vmatprep.mubr.msk.f32.mxu0 %vm285_vm0, %v207_v33  ;;  %677 = vmatprep.mubr.msk.f32.mxu1 %vm285_vm0, %v215_v34 }
  0x3c   : > { %267 = vperm.xlu0 %749, %v241_v35   ;;  %272 = vperm.xlu1 %750, %v242_v36  }
  0x3e   : > { %389 = vmatmul.mubr.f32.gmra.mxu0 %v206_v37  ;;  %409 = vmatmul.mubr.f32.gmra.mxu1 %v214_v38 }
  0x3f   : > { %674 = vmatprep.mubr.msk.f32.mxu0 %vm285_vm0, %v209_v39  ;;  %678 = vmatprep.mubr.msk.f32.mxu1 %vm285_vm0, %v217_v40 }
  0x40   : > { %277 = vperm.xlu0 %749, %v243_v41   ;;  %282 = vperm.xlu1 %750, %v244_v42  }
  0x42   : > { %394 = vmatmul.mubr.f32.gmra.mxu0 %v208_v43  ;;  %414 = vmatmul.mubr.f32.gmra.mxu1 %v216_v44 }
  0x44   : > { %752 = vset.pattern.permute.xlu1 %v783_v45  ;;  %751 = vset.pattern.permute.xlu0 %v783_v45 }
  0x45   : > { %496 = vperm.xlu1 %752, %v238_v29   ;;  %492 = vperm.xlu0 %751, %v839_v4  }
  0x49   : > { %500 = vperm.xlu1 %752, %v850_v5   ;;  %504 = vperm.xlu0 %751, %v240_v30  }
  0x4d   : > { %508 = vperm.xlu1 %752, %v241_v35   ;;  %512 = vperm.xlu0 %751, %v242_v36  }
  0x51   : > { %516 = vperm.xlu1 %752, %v243_v41   ;;  %520 = vperm.xlu0 %751, %v244_v42  }
  0x55   : > { %753 = vset.pattern.permute.xlu1 %v784_v46  ;;  %754 = vset.pattern.permute.xlu0 %v784_v46 }
  0x56   : > { %532 = vperm.xlu1 %753, %v839_v4   ;;  %536 = vperm.xlu0 %754, %v238_v29  }
  0x5a   : > { %540 = vperm.xlu1 %753, %v850_v5   ;;  %548 = vperm.xlu0 %754, %v241_v35  }
  0x5e   : > { %544 = vperm.xlu1 %753, %v240_v30   ;;  %556 = vperm.xlu0 %754, %v243_v41  }
  0x62   : > { %552 = vperm.xlu1 %753, %v242_v36  }
  0x66   : > { %560 = vperm.xlu1 %753, %v244_v42  }
  0x8b   : > { %v248_v47 = vpop.permute.xlu0 %247  ;;  %v258_v48 = vpop.permute.xlu1 %257 }
  0xb3   : > { %v253_v53 = vpop.permute.xlu0 %252  ;;  %v263_v56 = vpop.permute.xlu1 %262 }
  0xb7   : > { %v268_v63 = vpop.permute.xlu0 %267  ;;  %v273_v5 = vpop.permute.xlu1 %272 }
  0xbb   : > { %v278_v17 = vpop.permute.xlu0 %277  ;;  %v283_v21 = vpop.permute.xlu1 %282 }
  0xf6   : > { %v380_v49 = vpop.f32.mrf.mxu0  ;;  %v400_v50 = vpop.f32.mrf.mxu1 }
  0xf7   : > { %v381_v60 = vadd.f32 %v380_v49, %v248_v47  ;;  %v401_v10 = vadd.f32 %v400_v50, %v268_v63  ;;  %v497_v49 = vpop.permute.xlu1 %496 }
  0xf8   : > { %v382_v51 = vpop.f32.mrf.mxu0  ;;  %v402_v52 = vpop.f32.mrf.mxu1 }
  0xf9   : > { %v420_v4 = vsel %vm419_vm2, %v381_v60, 0.0  ;;  %v427_v19 = vsel %vm419_vm2, %v401_v10, 0.0 }
  0xfa   : > { %v385_v54 = vpop.f32.mrf.mxu0  ;;  %v405_v55 = vpop.f32.mrf.mxu1 }
  0xfb   : > { %v386_v57 = vadd.f32 %v385_v54, %v253_v53  ;;  %v406_v15 = vadd.f32 %v405_v55, %v273_v5 }
  0xfc   : > { %v387_v58 = vpop.f32.mrf.mxu0  ;;  %v407_v59 = vpop.f32.mrf.mxu1 }
  0xfd   : > { %v421_v0 = vsel %vm419_vm2, %v386_v57, 0.0  ;;  %v429_v23 = vsel %vm419_vm2, %v406_v15, 0.0 }
  0xfe   : > { %v390_v61 = vpop.f32.mrf.mxu0  ;;  %v410_v62 = vpop.f32.mrf.mxu1  ;;  %v422_v7 = vadd.f32 %v421_v0, %v420_v4 }
  0xff   : > { %v391_v1 = vadd.f32 %v390_v61, %v258_v48  ;;  %v411_v20 = vadd.f32 %v410_v62, %v278_v17  ;;  %v501_v62 = vpop.permute.xlu1 %500 }
 0x100   : > { %v392_v2 = vpop.f32.mrf.mxu0  ;;  %v412_v3 = vpop.f32.mrf.mxu1 }
 0x101   : > { %v423_v6 = vsel %vm419_vm2, %v391_v1, 0.0  ;;  %v431_v26 = vsel %vm419_vm2, %v411_v20, 0.0 }
 0x102   : > { %v395_v8 = vpop.f32.mrf.mxu0  ;;  %v415_v9 = vpop.f32.mrf.mxu1  ;;  %v424_v12 = vadd.f32 %v423_v6, %v422_v7 }
 0x103   : > { %v396_v11 = vadd.f32 %v395_v8, %v263_v56  ;;  %v416_v24 = vadd.f32 %v415_v9, %v283_v21  ;;  %v509_v6 = vpop.permute.xlu1 %508  ;;  %v493_v8 = vpop.permute.xlu0 %492 }
 0x104   : > { %v397_v13 = vpop.f32.mrf.mxu0  ;;  %v417_v14 = vpop.f32.mrf.mxu1 }
 0x105   : > { %v425_v16 = vsel %vm419_vm2, %v396_v11, 0.0  ;;  %v433_v28 = vsel %vm419_vm2, %v416_v24, 0.0 }
 0x106   : > { %v426_v18 = vadd.f32 %v425_v16, %v424_v12 }
 0x107   : > { %v505_v13 = vpop.permute.xlu0 %504 }
 0x108   : > { %v428_v22 = vadd.f32 %v427_v19, %v426_v18 }
 0x10a   : > { %v430_v25 = vadd.f32 %v429_v23, %v428_v22 }
 0x10b   : > { %v513_v18 = vpop.permute.xlu0 %512 }
 0x10c   : > { %v432_v27 = vadd.f32 %v431_v26, %v430_v25 }
 0x10e   : > { %v434_v29 = vadd.f32 %v433_v28, %v432_v27 }
 0x10f   : > { %v521_v21 = vpop.permute.xlu0 %520 }
 0x110   : > { %v435_v30 = vrot.slane %v434_v29, 4 }
 0x112   : > { %v436_v31 = vadd.f32 %v435_v30, %v434_v29 }
 0x113   : > { %v537_v23 = vpop.permute.xlu0 %536 }
 0x114   : > { %v437_v32 = vrot.slane %v436_v31, 2 }
 0x116   : > { %v438_v33 = vadd.f32 %v437_v32, %v436_v31 }
 0x117   : > { %v549_v25 = vpop.permute.xlu0 %548 }
 0x118   : > { %v439_v34 = vrot.slane %v438_v33, 1 }
 0x11a   : > { %v440_v35 = vadd.f32 %v439_v34, %v438_v33 }
 0x11c   : > { %v442_v36 = vmul.f32 0.015625, %v440_v35 }
 0x11e   : > { %v443_v37 = vsub.f32 %v381_v60, %v442_v36  ;;  %v445_v38 = vsub.f32 %v391_v1, %v442_v36  ;;  %v446_v39 = vsub.f32 %v396_v11, %v442_v36  ;;  %v444_v40 = vsub.f32 %v386_v57, %v442_v36  ;;  %v517_v11 = vpop.permute.xlu1 %516 }
 0x11f   : > { %v447_v42 = vsub.f32 %v401_v10, %v442_v36  ;;  %v448_v46 = vsub.f32 %v406_v15, %v442_v36  ;;  %v449_v51 = vsub.f32 %v411_v20, %v442_v36  ;;  %v450_v55 = vsub.f32 %v416_v24, %v442_v36 }
 0x120   : > { %v451_v41 = vmul.f32 %v443_v37, %v443_v37  ;;  %v452_v43 = vmul.f32 %v444_v40, %v444_v40  ;;  %v453_v44 = vmul.f32 %v445_v38, %v445_v38  ;;  %v454_v47 = vmul.f32 %v446_v39, %v446_v39 }
 0x121   : > { %v455_v52 = vmul.f32 %v447_v42, %v447_v42  ;;  %v456_v56 = vmul.f32 %v448_v46, %v448_v46  ;;  %v457_v59 = vmul.f32 %v449_v51, %v449_v51  ;;  %v458_v63 = vmul.f32 %v450_v55, %v450_v55 }
 0x122   : > { %v459_v45 = vsel %vm419_vm2, %v451_v41, 0.0  ;;  %v460_v48 = vsel %vm419_vm2, %v452_v43, 0.0  ;;  %v462_v53 = vsel %vm419_vm2, %v453_v44, 0.0  ;;  %v464_v57 = vsel %vm419_vm2, %v454_v47, 0.0  ;;  %v533_v16 = vpop.permute.xlu1 %532 }
 0x123   : > { %v461_v50 = vadd.f32 %v460_v48, %v459_v45  ;;  %v466_v60 = vsel %vm419_vm2, %v455_v52, 0.0  ;;  %v468_v0 = vsel %vm419_vm2, %v456_v56, 0.0  ;;  %v470_v2 = vsel %vm419_vm2, %v457_v59, 0.0 }
 0x124   : > { %v472_v4 = vsel %vm419_vm2, %v458_v63, 0.0 }
 0x125   : > { %v463_v54 = vadd.f32 %v462_v53, %v461_v50 }
 0x126   : > { %v541_v20 = vpop.permute.xlu1 %540 }
 0x127   : > { %v465_v58 = vadd.f32 %v464_v57, %v463_v54 }
 0x129   : > { %v467_v61 = vadd.f32 %v466_v60, %v465_v58 }
 0x12a   : > { %v545_v22 = vpop.permute.xlu1 %544 }
 0x12b   : > { %v469_v1 = vadd.f32 %v468_v0, %v467_v61 }
 0x12d   : > { %v471_v3 = vadd.f32 %v470_v2, %v469_v1 }
 0x12e   : > { %v553_v24 = vpop.permute.xlu1 %552 }
 0x12f   : > { %v473_v5 = vadd.f32 %v472_v4, %v471_v3 }
 0x131   : > { %v474_v7 = vrot.slane %v473_v5, 4 }
 0x133   : > { %v475_v9 = vadd.f32 %v474_v7, %v473_v5 }
 0x135   : > { %v476_v10 = vrot.slane %v475_v9, 2 }
 0x137   : > { %v477_v12 = vadd.f32 %v476_v10, %v475_v9 }
 0x139   : > { %v478_v14 = vrot.slane %v477_v12, 1 }
 0x13b   : > { %v479_v15 = vadd.f32 %v478_v14, %v477_v12 }
 0x13d   : > { %v480_v17 = vmul.f32 0.015625, %v479_v15 }
 0x13f   : > { %v481_v19 = vadd.f32 1e-05, %v480_v17 }
 0x141   : > { %755 = vrsqrt.f32 %v481_v19 }
 0x14e   : > { %v756_v26 = vpop.eup %755 }
 0x14f   : > { %v484_v27 = vmul.f32 %v756_v26, %v444_v40  ;;  %v485_v28 = vmul.f32 %v756_v26, %v445_v38  ;;  %v487_v29 = vmul.f32 %v756_v26, %v447_v42  ;;  %v483_v30 = vmul.f32 %v756_v26, %v443_v37  ;;  %v561_v37 = vpop.permute.xlu1 %560 }
 0x150   : > { %v489_v31 = vmul.f32 %v756_v26, %v449_v51  ;;  %v486_v32 = vmul.f32 %v756_v26, %v446_v39  ;;  %v488_v33 = vmul.f32 %v756_v26, %v448_v46  ;;  %v490_v34 = vmul.f32 %v756_v26, %v450_v55  ;;  %v557_v39 = vpop.permute.xlu0 %556 }
 0x151   : > { %v524_v35 = vmul.f32 %v497_v49, %v484_v27  ;;  %v525_v36 = vmul.f32 %v501_v62, %v485_v28  ;;  %v527_v41 = vmul.f32 %v509_v6, %v487_v29  ;;  %v523_v43 = vmul.f32 %v493_v8, %v483_v30 }
 0x152   : > { %v529_v44 = vmul.f32 %v517_v11, %v489_v31  ;;  %v526_v45 = vmul.f32 %v505_v13, %v486_v32  ;;  %v528_v47 = vmul.f32 %v513_v18, %v488_v33  ;;  %v530_v40 = vmul.f32 %v521_v21, %v490_v34 }
 0x153   : > { %v563_v38 = vadd.f32 %v533_v16, %v523_v43  ;;  %v565_v42 = vadd.f32 %v541_v20, %v525_v36  ;;  %v564_v48 = vadd.f32 %v537_v23, %v524_v35  ;;  %v567_v50 = vadd.f32 %v549_v25, %v527_v41 }
 0x154   : > { %v566_v46 = vadd.f32 %v545_v22, %v526_v45  ;;  %v568_v51 = vadd.f32 %v553_v24, %v528_v47  ;;  %v570_v49 = vadd.f32 %v561_v37, %v530_v40  ;;  %v569_v52 = vadd.f32 %v557_v39, %v529_v44 }
 0x155   : > { %571 = vst.msk [vmem:[%s201_s25] sm:$0xff] %vm419_vm2, %v563_v38  ;;  %573 = vst.msk [vmem:[%s201_s25 + $0x10] sm:$0xff] %vm419_vm2, %v565_v42 }
 0x156   : > { %572 = vst.msk [vmem:[%s201_s25 + $0x8] sm:$0xff] %vm419_vm2, %v564_v48  ;;  %575 = vst.msk [vmem:[%s201_s25 + $0x20] sm:$0xff] %vm419_vm2, %v567_v50 }
 0x157   : > { %574 = vst.msk [vmem:[%s201_s25 + $0x18] sm:$0xff] %vm419_vm2, %v566_v46  ;;  %576 = vst.msk [vmem:[%s201_s25 + $0x28] sm:$0xff] %vm419_vm2, %v568_v51 }
 0x158   : > { %578 = vst.msk [vmem:[%s201_s25 + $0x38] sm:$0xff] %vm419_vm2, %v570_v49  ;;  %577 = vst.msk [vmem:[%s201_s25 + $0x30] sm:$0xff] %vm419_vm2, %v569_v52 }
 0x159 PF: > { %s13_s14 = sadd.s32 1, %s779_s14   ;;  %s1019_s12 = smov %s775_s13 }
 0x15a   : > { %p10_p5 = scmp.ge.s32.totalorder %s13_s14, 4   ;;  %s1020_s13 = smov %s1022_s15 }
 0x15c   :  { %12 = sbr.rel (!%p10_p5) target bundleno = 2 (0x2), region = 62 }

</bundles_post_ra>
